<compile_context>
chip_gen: v6e
topology: v6e:2x2x1
jax: 0.10.0
libtpu: 0.0.40
codegen_flags: <defaults>
</compile_context>

<pallas_src>
import functools

import jax
import jax.numpy as jnp
from jax import lax
from jax.experimental import pallas as pl
from jax.experimental.pallas import tpu as pltpu

LANE = 128
MAX_TILE_ROWS = 2048  # 2048 x 128 f32 = 1 MiB per input tile (multiple of 8/16/32 sublanes)


def _round_up(x, m):
    return (x + m - 1) // m * m


def _gen_l1_partial_kernel(img_ref, tgt_ref, out_ref, *,
                           n_elems, tile_rows, tiles_per_split, tiles_total):
    """Accumulate sum(|img - tgt|) for this split into an (8,128) partial-sum block."""
    c = pl.program_id(0)            # split (TensorCore) index
    i = pl.program_id(1)            # tile index within the split
    t = c * tiles_per_split + i     # global (un-clamped) tile index

    @pl.when(i == 0)
    def _init():
        out_ref[...] = jnp.zeros_like(out_ref)

    def _abs_diff():
        return jnp.abs(img_ref[...].astype(jnp.float32) -
                       tgt_ref[...].astype(jnp.float32))

    def _accumulate(diff):
        # (tile_rows,128) -> (tile_rows//8, 8, 128): sum(axis=0) is vreg-wise VPU adds,
        # no XLU / scalar dependency in the hot loop.
        part = diff.reshape(tile_rows // 8, 8, LANE).sum(axis=0)
        out_ref[...] += part.reshape(1, 8, LANE)

    # Hot path: every tile except the (possibly ragged) globally-last one.
    @pl.when(t < tiles_total - 1)
    def _full_tile():
        _accumulate(_abs_diff())

    # Tail tile: mask out elements past the true element count (block padding may
    # contain garbage, so mask *before* the sum with a select, not a multiply).
    @pl.when(t == tiles_total - 1)
    def _tail_tile():
        diff = _abs_diff()
        row = lax.broadcasted_iota(jnp.int32, (tile_rows, LANE), 0)
        lane = lax.broadcasted_iota(jnp.int32, (tile_rows, LANE), 1)
        gidx = (t * tile_rows + row) * LANE + lane
        _accumulate(jnp.where(gidx < n_elems, diff, 0.0))

    # Tiles with t > tiles_total - 1 only exist when the tile count does not split
    # evenly across the parallel axis; their clamped/duplicate data is skipped.


def gen_loss(out_labels, out_images, target_images, epoch):
    """Pallas-TPU implementation of GenLoss.forward. Returns an f32 scalar."""
    assert out_images.shape == target_images.shape
    n = out_images.size

    # --- lane-dense view of the images (contiguous reshape: no HBM copy) ---------
    img_flat = out_images.reshape(-1)
    tgt_flat = target_images.reshape(-1)
    if n % LANE != 0:
        # Rare for image tensors: pad only the trailing <128 elements so the slab is
        # (rows, 128); the in-kernel mask (gidx < n) excludes the pad from the sum.
        pad = LANE - n % LANE
        img_flat = jnp.pad(img_flat, (0, pad))
        tgt_flat = jnp.pad(tgt_flat, (0, pad))
    rows = img_flat.size // LANE
    img2d = img_flat.reshape(rows, LANE)
    tgt2d = tgt_flat.reshape(rows, LANE)

    # Sublane multiple matches the packed layout of the input dtype (8 f32 / 16 bf16 / 32 i8).
    itemsize = jnp.dtype(out_images.dtype).itemsize
    sub = 8 * max(1, 4 // itemsize)
    tile_rows = min(MAX_TILE_ROWS, _round_up(rows, sub))

    tiles_total = pl.cdiv(rows, tile_rows)
    n_splits = 2 if tiles_total >= 2 else 1          # use both TensorCores on v7x
    tiles_per_split = pl.cdiv(tiles_total, n_splits)

    if n_splits * tiles_per_split == tiles_total:
        def img_index_map(c, i):
            return (c * tiles_per_split + i, 0)
    else:
        # Odd tile count: clamp the block index so the DMA stays in-bounds; the
        # kernel skips the duplicate tile via its (un-clamped) global index.
        def img_index_map(c, i):
            return (jnp.minimum(c * tiles_per_split + i, tiles_total - 1), 0)

    kernel = functools.partial(
        _gen_l1_partial_kernel,
        n_elems=n,
        tile_rows=tile_rows,
        tiles_per_split=tiles_per_split,
        tiles_total=tiles_total,
    )

    partials = pl.pallas_call(
        kernel,
        out_shape=jax.ShapeDtypeStruct((n_splits, 8, LANE), jnp.float32),
        grid_spec=pltpu.PrefetchScalarGridSpec(
            num_scalar_prefetch=0,
            grid=(n_splits, tiles_per_split),
            in_specs=[
                pl.BlockSpec((tile_rows, LANE), img_index_map),
                pl.BlockSpec((tile_rows, LANE), img_index_map),
            ],
            out_specs=pl.BlockSpec((1, 8, LANE), lambda c, i: (c, 0, 0)),
        ),
        compiler_params=pltpu.CompilerParams(
            dimension_semantics=("parallel", "arbitrary")),
    )(img2d, tgt2d)

    image_loss = jnp.sum(partials) / jnp.float32(n)

    # Tiny O(batch) reduction + scalar epoch scaling: plain XLA (per review).
    adversarial_loss = -jnp.mean(out_labels.astype(jnp.float32))
    return image_loss + 0.01 * adversarial_loss / (jnp.float32(epoch) + 1.0)


def gen_loss_ref(out_labels, out_images, target_images, epoch):
    adv = -jnp.mean(out_labels.astype(jnp.float32))
    img = jnp.mean(jnp.abs(out_images.astype(jnp.float32) -
                           target_images.astype(jnp.float32)))
    return img + 0.01 * adv / (epoch + 1.0)


if __name__ == "__main__":
    key = jax.random.PRNGKey(0)
    k1, k2, k3 = jax.random.split(key, 3)

    # Shapes implied by the forward: discriminator labels (N, 1), images NCHW.
    out_labels = jax.random.normal(k1, (2, 1), dtype=jnp.float32)
    out_images = jax.random.normal(k2, (2, 4, 16, 16), dtype=jnp.float32)
    target_images = jax.random.normal(k3, (2, 4, 16, 16), dtype=jnp.float32)
    epoch = 3

    result = gen_loss(out_labels, out_images, target_images, epoch)
    result = jax.block_until_ready(result)

    expected = gen_loss_ref(out_labels, out_images, target_images, epoch)
    assert jnp.allclose(result, expected, rtol=1e-5, atol=1e-5), (result, expected)

    print("KERNEL_OK")
</pallas_src>

<mosaic_0001>
module attributes {stable_mosaic.version = 11 : i64} {
  func.func @_gen_l1_partial_kernel(%arg0: i32, %arg1: i32, %arg2: memref<16x128xf32, #tpu.memory_space<vmem>>, %arg3: memref<16x128xf32, #tpu.memory_space<vmem>>, %arg4: memref<1x8x128xf32, #tpu.memory_space<vmem>>) attributes {dimension_semantics = [#tpu.dimension_semantics<parallel>, #tpu.dimension_semantics<arbitrary>], iteration_bounds = array<i64: 1, 1>, scalar_prefetch = 0 : i64, scratch_operands = 0 : i64, tpu.core_type = #tpu.core_type<tc>, window_params = [{transform_indices = @transform_0, window_bounds = array<i64: 16, 128>}, {transform_indices = @transform_1, window_bounds = array<i64: 16, 128>}, {transform_indices = @transform_2, window_bounds = array<i64: 1, 8, 128>}]} {
    %c1_i32 = arith.constant 1 : i32
    %0 = arith.muli %arg0, %c1_i32 : i32
    %1 = arith.addi %0, %arg1 : i32
    %c0_i32 = arith.constant 0 : i32
    %2 = arith.cmpi eq, %arg1, %c0_i32 : i32
    %3 = arith.extui %2 : i1 to i32
    %c0_i32_0 = arith.constant 0 : i32
    %4 = arith.cmpi ne, %3, %c0_i32_0 : i32
    scf.if %4 {
      %cst = arith.constant 0.000000e+00 : f32
      %11 = vector.broadcast %cst : f32 to vector<1x8x128xf32>
      %c0 = arith.constant 0 : index
      %c0_5 = arith.constant 0 : index
      %c0_6 = arith.constant 0 : index
      %12 = vector.load %arg4[%c0, %c0_5, %c0_6] : memref<1x8x128xf32, #tpu.memory_space<vmem>>, vector<1x8x128xf32>
      tpu.vector_store %arg4[%c0, %c0_5, %c0_6], %11 {strides = array<i32>} : memref<1x8x128xf32, #tpu.memory_space<vmem>>, vector<1x8x128xf32>,
    } else {
    }
    %c0_i32_1 = arith.constant 0 : i32
    %5 = arith.cmpi slt, %1, %c0_i32_1 : i32
    %6 = arith.extui %5 : i1 to i32
    %c0_i32_2 = arith.constant 0 : i32
    %7 = arith.cmpi ne, %6, %c0_i32_2 : i32
    scf.if %7 {
      %c0 = arith.constant 0 : index
      %c0_5 = arith.constant 0 : index
      %11 = vector.load %arg2[%c0, %c0_5] : memref<16x128xf32, #tpu.memory_space<vmem>>, vector<16x128xf32>
      %c0_6 = arith.constant 0 : index
      %c0_7 = arith.constant 0 : index
      %12 = vector.load %arg3[%c0_6, %c0_7] : memref<16x128xf32, #tpu.memory_space<vmem>>, vector<16x128xf32>
      %13 = arith.subf %11, %12 : vector<16x128xf32>
      %14 = math.absf %13 : vector<16x128xf32>
      %15 = vector.shape_cast %14 : vector<16x128xf32> to vector<2x8x128xf32>
      %cst = arith.constant dense<0.000000e+00> : vector<8x128xf32>
      %16 = vector.multi_reduction <add>, %15, %cst [0] : vector<2x8x128xf32> to vector<8x128xf32>
      %c0_8 = arith.constant 0 : index
      %c0_9 = arith.constant 0 : index
      %c0_10 = arith.constant 0 : index
      %17 = vector.load %arg4[%c0_8, %c0_9, %c0_10] : memref<1x8x128xf32, #tpu.memory_space<vmem>>, vector<1x8x128xf32>
      %18 = vector.shape_cast %16 : vector<8x128xf32> to vector<1x8x128xf32>
      %19 = arith.addf %17, %18 : vector<1x8x128xf32>
      %c0_11 = arith.constant 0 : index
      %c0_12 = arith.constant 0 : index
      %c0_13 = arith.constant 0 : index
      %20 = vector.load %arg4[%c0_11, %c0_12, %c0_13] : memref<1x8x128xf32, #tpu.memory_space<vmem>>, vector<1x8x128xf32>
      tpu.vector_store %arg4[%c0_11, %c0_12, %c0_13], %19 {strides = array<i32>} : memref<1x8x128xf32, #tpu.memory_space<vmem>>, vector<1x8x128xf32>,
    } else {
    }
    %c0_i32_3 = arith.constant 0 : i32
    %8 = arith.cmpi eq, %1, %c0_i32_3 : i32
    %9 = arith.extui %8 : i1 to i32
    %c0_i32_4 = arith.constant 0 : i32
    %10 = arith.cmpi ne, %9, %c0_i32_4 : i32
    scf.if %10 {
      %c0 = arith.constant 0 : index
      %c0_5 = arith.constant 0 : index
      %11 = vector.load %arg2[%c0, %c0_5] : memref<16x128xf32, #tpu.memory_space<vmem>>, vector<16x128xf32>
      %c0_6 = arith.constant 0 : index
      %c0_7 = arith.constant 0 : index
      %12 = vector.load %arg3[%c0_6, %c0_7] : memref<16x128xf32, #tpu.memory_space<vmem>>, vector<16x128xf32>
      %13 = arith.subf %11, %12 : vector<16x128xf32>
      %14 = math.absf %13 : vector<16x128xf32>
      %15 = tpu.iota {dimensions = array<i32: 0>} : vector<16x128xi32>
      %16 = tpu.iota {dimensions = array<i32: 1>} : vector<16x128xi32>
      %c16_i32 = arith.constant 16 : i32
      %17 = arith.muli %1, %c16_i32 : i32
      %18 = vector.broadcast %17 : i32 to vector<16x128xi32>
      %19 = arith.addi %18, %15 : vector<16x128xi32>
      %c128_i32 = arith.constant 128 : i32
      %20 = vector.broadcast %c128_i32 : i32 to vector<16x128xi32>
      %21 = arith.muli %19, %20 : vector<16x128xi32>
      %22 = arith.addi %21, %16 : vector<16x128xi32>
      %c2048_i32 = arith.constant 2048 : i32
      %23 = vector.broadcast %c2048_i32 : i32 to vector<16x128xi32>
      %24 = arith.cmpi slt, %22, %23 : vector<16x128xi32>
      %cst = arith.constant 0.000000e+00 : f32
      %25 = vector.broadcast %cst : f32 to vector<16x128xf32>
      %26 = arith.select %24, %14, %25 : vector<16x128xi1>, vector<16x128xf32>
      %27 = vector.shape_cast %26 : vector<16x128xf32> to vector<2x8x128xf32>
      %cst_8 = arith.constant dense<0.000000e+00> : vector<8x128xf32>
      %28 = vector.multi_reduction <add>, %27, %cst_8 [0] : vector<2x8x128xf32> to vector<8x128xf32>
      %c0_9 = arith.constant 0 : index
      %c0_10 = arith.constant 0 : index
      %c0_11 = arith.constant 0 : index
      %29 = vector.load %arg4[%c0_9, %c0_10, %c0_11] : memref<1x8x128xf32, #tpu.memory_space<vmem>>, vector<1x8x128xf32>
      %30 = vector.shape_cast %28 : vector<8x128xf32> to vector<1x8x128xf32>
      %31 = arith.addf %29, %30 : vector<1x8x128xf32>
      %c0_12 = arith.constant 0 : index
      %c0_13 = arith.constant 0 : index
      %c0_14 = arith.constant 0 : index
      %32 = vector.load %arg4[%c0_12, %c0_13, %c0_14] : memref<1x8x128xf32, #tpu.memory_space<vmem>>, vector<1x8x128xf32>
      tpu.vector_store %arg4[%c0_12, %c0_13, %c0_14], %31 {strides = array<i32>} : memref<1x8x128xf32, #tpu.memory_space<vmem>>, vector<1x8x128xf32>,
    } else {
    }
    return
  }
  func.func @transform_0(%arg0: i32, %arg1: i32) -> (i32, i32) {
    %c1_i32 = arith.constant 1 : i32
    %0 = arith.muli %arg0, %c1_i32 : i32
    %1 = arith.addi %0, %arg1 : i32
    %c0_i32 = arith.constant 0 : i32
    %c0_i32_0 = arith.constant 0 : i32
    return %1, %c0_i32 : i32, i32
  }
  func.func @transform_1(%arg0: i32, %arg1: i32) -> (i32, i32) {
    %c1_i32 = arith.constant 1 : i32
    %0 = arith.muli %arg0, %c1_i32 : i32
    %1 = arith.addi %0, %arg1 : i32
    %c0_i32 = arith.constant 0 : i32
    %c0_i32_0 = arith.constant 0 : i32
    return %1, %c0_i32 : i32, i32
  }
  func.func @transform_2(%arg0: i32, %arg1: i32) -> (i32, i32, i32) {
    %c0_i32 = arith.constant 0 : i32
    %c0_i32_0 = arith.constant 0 : i32
    %c0_i32_1 = arith.constant 0 : i32
    return %arg0, %c0_i32, %c0_i32_0 : i32, i32, i32
  }
}

</mosaic_0001>

<bundles_post_ra>
// kernel: tpu_custom_call.1
= control target key start
LH: loop header
LB: loop body
LE: loop exit
PB: predicated region body
PF: predicated region fallthrough
CT: control target
= control target key end

     0   :  { %7 = vsyncpa [#allocation3], 0  ;;  %s224_s0 = inlined_call_operand.hbm [shape: f32[16,128], index: 0, kind: input, shape index: {}]   ;;  %s225_s1 = inlined_call_operand.hbm [shape: f32[16,128], index: 1, kind: input, shape index: {}]   ;;  %s226_s2 = inlined_call_operand.hbm [shape: f32[1,8,128], index: 2, kind: output, shape index: {}]  }
   0x1   :  { %8 = vsyncpa [#allocation6], 0 }
   0x2   :  { %9 = vsyncpa [#allocation4], 0  ;;  %s195_s9 = smov [#allocation2]  }
   0x3   :  { %s19_s10 = sshll.u32 %s195_s9, 4  ;;  %s20_s10 = int_to_ptr.vmem [resolvable:$true] %s19_s10 }
   0x4   :  { %s137_s11 = scalar_lea.vmem %s20_s10, 256  ;;  %p142_p1 = scmp.lt.s32.totalorder %s20_s10, %s20_s10 }
   0x5   :  { %p138_p0 = scmp.ne.s32.totalorder %s20_s10, %s137_s11  ;;  %p143_p2 = scmp.lt.s32.totalorder %s137_s11, %s137_s11 }
   0x7   :  { %p144_p3 = por %p143_p2, %p142_p1 }
   0x9   :  { %p145_p4 = pnand %p144_p3, %p138_p0 }
   0xb   :  { %148 = shalt.err (!%p145_p4)
}
   0xc   :  { %s196_s12 = smov 128   ;;  %s197_s13 = smov 8  }
   0xd   :  { %25 = dma.hbm_to_vmem [thread:$0]  %s224_s0, 256, %s20_s10, [#allocation3], %s196_s12, %s196_s12, %s197_s13  }
   0xe   :  { %s198_s16 = smov [#allocation5]  }
   0xf   :  { %s35_s17 = sshll.u32 %s198_s16, 4  ;;  %s36_s17 = int_to_ptr.vmem [resolvable:$true] %s35_s17 }
  0x10   :  { %s157_s18 = scalar_lea.vmem %s36_s17, 256  ;;  %p162_p6 = scmp.lt.s32.totalorder %s36_s17, %s36_s17 }
  0x11   :  { %p158_p5 = scmp.ne.s32.totalorder %s36_s17, %s157_s18  ;;  %p163_p7 = scmp.lt.s32.totalorder %s157_s18, %s157_s18 }
  0x13   :  { %p164_p8 = por %p163_p7, %p162_p6 }
  0x15   :  { %p165_p9 = pnand %p164_p8, %p158_p5 }
  0x17   :  { %168 = shalt.err (!%p165_p9)
}
  0x18   :  { %41 = dma.hbm_to_vmem [thread:$0]  %s225_s1, 256, %s36_s17, [#allocation6], %s196_s12, %s196_s12, %s197_s13  }
  0x19   :  { %189 = dma.done.wait [#allocation3], 256  }
  0x1a   :  { %190 = vsyncadd [#allocation3], 4294967040 }
  0x1b   :  { %191 = dma.done.wait [#allocation6], 256  }
  0x1c   :  { %192 = vsyncadd [#allocation6], 4294967040  ;;  %v86_v0 = vlaneseq  ;;  %v78_v7 = vld [vmem:[#allocation2] sm:$0xff]  ;;  %v79_v8 = vld [vmem:[#allocation2 + $0x8] sm:$0xff]  ;;  %s199_s0 = smov [#allocation7]  }
  0x1d   :  { %v80_v9 = vld [vmem:[#allocation5] sm:$0xff]  ;;  %v81_v10 = vld [vmem:[#allocation5 + $0x8] sm:$0xff]  ;;  %s113_s1 = sshll.u32 %s199_s0, 4  ;;  %s114_s1 = int_to_ptr.vmem [resolvable:$true] %s113_s1 }
  0x1e   :  { %v87_v1 = vshrl.u32 %v86_v0, 7  ;;  %v90_v2 = vand.u32 127, %v86_v0  ;;  %v82_v11 = vsub.f32 %v78_v7, %v80_v9  ;;  %v83_v13 = vsub.f32 %v79_v8, %v81_v10  ;;  %s169_s21 = scalar_lea.vmem %s114_s1, 128  ;;  %p174_p11 = scmp.lt.s32.totalorder %s114_s1, %s114_s1 }
  0x1f   :  { %p170_p10 = scmp.ne.s32.totalorder %s114_s1, %s169_s21  ;;  %p175_p12 = scmp.lt.s32.totalorder %s169_s21, %s169_s21 }
  0x20   :  { %v88_v3 = vadd.s32 8, %v87_v1  ;;  %v95_v4 = vmul.u32 128, %v87_v1  ;;  %v84_v14 = vand.u32 2147483647, %v82_v11  ;;  %v85_v15 = vand.u32 2147483647, %v83_v13 }
  0x21   :  { %p176_p13 = por %p175_p12, %p174_p11 }
  0x22   :  { %v96_v5 = vmul.u32 128, %v88_v3  ;;  %v97_v6 = vadd.s32 %v95_v4, %v90_v2 }
  0x23   :  { %p177_p0 = pnand %p176_p13, %p170_p10 }
  0x24   :  { %v98_v12 = vadd.s32 %v96_v5, %v90_v2  ;;  %vm99_vm0 = vcmp.lt.s32.totalorder %v97_v6, 2048 }
  0x25   :  { %v101_v16 = vsel %vm99_vm0, %v84_v14, 0.0 }
  0x26   :  { %vm100_vm1 = vcmp.lt.s32.totalorder %v98_v12, 2048 }
  0x27   :  { %v102_v17 = vsel %vm100_vm1, %v85_v15, 0.0 }
  0x28   :  { %v103_v18 = vadd.f32 %v102_v17, %v101_v16 }
  0x2a   :  { %106 = vst [vmem:[#allocation7] sm:$0xff] %v103_v18 }
  0x2b   :  { %180 = shalt.err (!%p177_p0)
}
  0x2c   :  { %116 = dma.vmem_to_hbm [thread:$0]  %s114_s1, 128, %s226_s2, [#allocation4]  }
  0x2d   :  { %193 = dma.done.wait [#allocation4], 128  }
  0x2e   :  { %194 = vsyncadd [#allocation4], 4294967168 }
  0x2f   :  { %120 = vsyncpa [#allocation3], 1 }
  0x30   :  { %121 = vsyncpa [#allocation6], 1 }
  0x31   :  { %122 = vsyncpa [#allocation4], 1 }

</bundles_post_ra>
